<compile_context>
chip_gen: v6e
topology: v6e:2x2x1
jax: 0.10.0
libtpu: 0.0.40
codegen_flags: <defaults>
</compile_context>

<pallas_src>
import jax
import jax.numpy as jnp
from jax.experimental import pallas as pl
from jax.experimental.pallas import tpu as pltpu

_CHUNK = 512          # batch elements (lanes) per inner chunk
_TB_CAP = 16384       # max batch tile per grid step


def mlp_kernel(x_ref, w1b_ref, w2_ref, b2_ref, w3_ref, b3_ref, o_ref):
    # ---- grid-step-invariant parameters (tiny; read once per step) ----
    w1b = w1b_ref[...]                                  # (50, 3): [:, :2] = W1, [:, 2:3] = b1
    w2_bf = w2_ref[...].astype(jnp.bfloat16)            # (25, 50) bf16 -> single MXU pass
    b2 = b2_ref[...]                                    # (25, 1) f32
    w3 = w3_ref[...]                                    # (25, 1) f32
    b3 = b3_ref[0, 0]                                   # scalar from SMEM

    tb = x_ref.shape[1]                                 # static
    n_chunks = tb // _CHUNK                             # static python int

    # Static Python loop -> static (zero-cost) lane slices.  Each chunk's
    # intermediates are dead after its o_ref store, so vreg pressure is bounded
    # by one chunk, not the whole (50, TB) tile.
    for c in range(n_chunks):
        c0 = c * _CHUNK
        x = x_ref[:, c0:c0 + _CHUNK]                    # (2, CHUNK) f32

        # ---- Layer 1 (K=2): two broadcast FMAs + bias on the VPU, f32 ----
        h1 = (w1b[:, 0:1] * x[0:1, :]
              + w1b[:, 1:2] * x[1:2, :]
              + w1b[:, 2:3])                            # (50, CHUNK)
        h1 = jnp.maximum(h1, 0.0)

        # ---- Layer 2: (25,50) @ (50,CHUNK) on the MXU, bf16 in / f32 acc ----
        h2 = jnp.dot(w2_bf, h1.astype(jnp.bfloat16),
                     preferred_element_type=jnp.float32) + b2   # (25, CHUNK)
        h2 = jnp.maximum(h2, 0.0)

        # ---- Layer 3 (N=1): elementwise mul + sublane reduce (VPU/XLU) ----
        out = jnp.sum(w3 * h2, axis=0, keepdims=True) + b3      # (1, CHUNK)

        o_ref[:, c0:c0 + _CHUNK] = out.astype(o_ref.dtype)


def mlp_forward(x, w1, b1, w2, b2, w3, b3, *, tb=None):
    """MLPModel forward.  x: (B, 2) f32 (row-major, like nn.Linear input).
    w1:(50,2) b1:(50,1) w2:(25,50) b2:(25,1) w3:(25,1) b3:(1,1).  Returns (B,1).
    `tb` (batch tile) is rounded up to a multiple of the 512-lane inner chunk."""
    B = x.shape[0]

    if tb is None:
        # Aim for >=2 grid steps so both v7x TensorCores get work, while each
        # step stays large enough to amortize the ~0.35us fixed per-step cost.
        tb = pl.cdiv(B, 2) if B > _CHUNK else B
        tb = min(tb, _TB_CAP)
    tb = max(_CHUNK, ((tb + _CHUNK - 1) // _CHUNK) * _CHUNK)
    n_tiles = pl.cdiv(B, tb)

    # Feature-major, batch-on-lanes view.  No explicit padding: Pallas handles
    # the ragged last batch tile (every column is independent; out-of-bounds
    # lanes compute garbage that is dropped at writeback).
    # TODO(synk): if upstream can keep activations as (2, B) feature-major,
    # drop this transpose (it is a separate XLA pass over x).
    x_t = jnp.transpose(x)                              # (2, B)
    w1b = jnp.concatenate([w1, b1], axis=1)             # (50, 3): bias folded into layer-1 block

    const = lambda a: pl.BlockSpec(a.shape, lambda i: (0, 0))   # grid-invariant, VMEM-resident

    out_t = pl.pallas_call(
        mlp_kernel,
        out_shape=jax.ShapeDtypeStruct((1, B), jnp.float32),
        grid_spec=pltpu.PrefetchScalarGridSpec(
            num_scalar_prefetch=0,
            grid=(n_tiles,),
            in_specs=[
                pl.BlockSpec((2, tb), lambda i: (0, i)),             # x tile (streams)
                const(w1b), const(w2), const(b2), const(w3),          # params resident in VMEM
                pl.BlockSpec(memory_space=pltpu.MemorySpace.SMEM),    # b3 scalar via SMEM
            ],
            out_specs=pl.BlockSpec((1, tb), lambda i: (0, i)),
        ),
        compiler_params=pltpu.CompilerParams(
            dimension_semantics=("parallel",),           # megacore sharding on v7x
            vmem_limit_bytes=16 * 1024 * 1024,           # working set << 16 MiB even at tb=16384
        ),
    )(x_t, w1b, w2, b2, w3, b3)

    return out_t.reshape(B, 1)


def init_params(key):
    """Deterministic init mimicking PyTorch nn.Linear defaults
    (uniform(-1/sqrt(fan_in), 1/sqrt(fan_in))).  Weights are (out, in),
    biases (out, 1); w3 is returned as a (25, 1) column for the VPU path."""
    def linear(k, fan_in, fan_out):
        kw, kb = jax.random.split(k)
        bound = 1.0 / jnp.sqrt(float(fan_in))
        w = jax.random.uniform(kw, (fan_out, fan_in), jnp.float32, -bound, bound)
        b = jax.random.uniform(kb, (fan_out, 1), jnp.float32, -bound, bound)
        return w, b

    k1, k2, k3 = jax.random.split(key, 3)
    w1, b1 = linear(k1, 2, 50)                           # (50, 2), (50, 1)
    w2, b2 = linear(k2, 50, 25)                          # (25, 50), (25, 1)
    w3_row, b3 = linear(k3, 25, 1)                       # (1, 25), (1, 1)
    w3 = jnp.transpose(w3_row)                           # (25, 1)
    return w1, b1, w2, b2, w3, b3


def mlp_reference(x, w1, b1, w2, b2, w3, b3):
    h = jnp.maximum(x @ w1.T + b1.T, 0.0)
    h = jnp.maximum(h @ w2.T + b2.T, 0.0)
    return h @ w3 + b3


if __name__ == "__main__":
    key = jax.random.PRNGKey(0)
    kx, kx2, kp = jax.random.split(key, 3)
    params = init_params(kp)

    # Tolerance is loosened vs the pure-f32 reference because layer 2 feeds
    # bf16 operands to the MXU (f32 accumulate), per the perf review.
    ATOL = RTOL = 5e-2

    # Small batch: single grid step, single in-kernel chunk, ragged tile.
    B = 8
    x = jax.random.normal(kx, (B, 2), jnp.float32)
    out = jax.block_until_ready(mlp_forward(x, *params))
    ref = mlp_reference(x, *params)
    assert out.shape == (B, 1)
    assert jnp.allclose(out, ref, atol=ATOL, rtol=RTOL), "mismatch vs reference (B=8)"

    # Larger non-multiple batch with an explicit tile: 2-step grid (both v7x
    # TCs), 2-chunk inner loop per step, ragged last tile (1200 = 1024 + 176).
    B2 = 1200
    x2 = jax.random.normal(kx2, (B2, 2), jnp.float32)
    out2 = jax.block_until_ready(mlp_forward(x2, *params, tb=1024))
    ref2 = mlp_reference(x2, *params)
    assert out2.shape == (B2, 1)
    assert jnp.allclose(out2, ref2, atol=ATOL, rtol=RTOL), "mismatch vs reference (B=1200)"

    print("KERNEL_OK")
</pallas_src>

<mosaic_0001>
module attributes {stable_mosaic.version = 11 : i64} {
  func.func @mlp_kernel(%arg0: i32, %arg1: memref<2x512xf32, #tpu.memory_space<vmem>>, %arg2: memref<50x3xf32, #tpu.memory_space<vmem>>, %arg3: memref<25x50xf32, #tpu.memory_space<vmem>>, %arg4: memref<25x1xf32, #tpu.memory_space<vmem>>, %arg5: memref<25x1xf32, #tpu.memory_space<vmem>>, %arg6: memref<1x1xf32, #tpu.memory_space<smem>>, %arg7: memref<1x512xf32, #tpu.memory_space<vmem>>) attributes {dimension_semantics = [#tpu.dimension_semantics<parallel>], iteration_bounds = array<i64: 1>, scalar_prefetch = 0 : i64, scratch_operands = 0 : i64, tpu.core_type = #tpu.core_type<tc>, window_params = [{transform_indices = @transform_0, window_bounds = array<i64: 2, 512>}, {pipeline_mode = #tpu.pipeline_mode<synchronous>, transform_indices = @transform_1, window_bounds = array<i64: 50, 3>}, {pipeline_mode = #tpu.pipeline_mode<synchronous>, transform_indices = @transform_2, window_bounds = array<i64: 25, 50>}, {pipeline_mode = #tpu.pipeline_mode<synchronous>, transform_indices = @transform_3, window_bounds = array<i64: 25, 1>}, {pipeline_mode = #tpu.pipeline_mode<synchronous>, transform_indices = @transform_4, window_bounds = array<i64: 25, 1>}, {transform_indices = @transform_5, window_bounds = array<i64: 1, 1>}, {transform_indices = @transform_6, window_bounds = array<i64: 1, 512>}]} {
    %c0 = arith.constant 0 : index
    %c0_0 = arith.constant 0 : index
    %0 = vector.load %arg2[%c0, %c0_0] : memref<50x3xf32, #tpu.memory_space<vmem>>, vector<50x3xf32>
    %c0_1 = arith.constant 0 : index
    %c0_2 = arith.constant 0 : index
    %1 = vector.load %arg3[%c0_1, %c0_2] : memref<25x50xf32, #tpu.memory_space<vmem>>, vector<25x50xf32>
    %2 = arith.truncf %1 : vector<25x50xf32> to vector<25x50xbf16>
    %c0_3 = arith.constant 0 : index
    %c0_4 = arith.constant 0 : index
    %3 = vector.load %arg4[%c0_3, %c0_4] : memref<25x1xf32, #tpu.memory_space<vmem>>, vector<25x1xf32>
    %c0_5 = arith.constant 0 : index
    %c0_6 = arith.constant 0 : index
    %4 = vector.load %arg5[%c0_5, %c0_6] : memref<25x1xf32, #tpu.memory_space<vmem>>, vector<25x1xf32>
    %c0_7 = arith.constant 0 : index
    %c0_8 = arith.constant 0 : index
    %5 = memref.load %arg6[%c0_7, %c0_8] : memref<1x1xf32, #tpu.memory_space<smem>>
    %c0_9 = arith.constant 0 : index
    %c0_10 = arith.constant 0 : index
    %6 = vector.load %arg1[%c0_9, %c0_10] : memref<2x512xf32, #tpu.memory_space<vmem>>, vector<2x512xf32>
    %7 = vector.extract_strided_slice %0 {offsets = [0, 0], sizes = [50, 1], strides = [1, 1]} : vector<50x3xf32> to vector<50x1xf32>
    %8 = vector.extract_strided_slice %6 {offsets = [0, 0], sizes = [1, 512], strides = [1, 1]} : vector<2x512xf32> to vector<1x512xf32>
    %9 = vector.broadcast %7 : vector<50x1xf32> to vector<50x512xf32>
    %10 = vector.broadcast %8 : vector<1x512xf32> to vector<50x512xf32>
    %11 = arith.mulf %9, %10 : vector<50x512xf32>
    %12 = vector.extract_strided_slice %0 {offsets = [0, 1], sizes = [50, 1], strides = [1, 1]} : vector<50x3xf32> to vector<50x1xf32>
    %13 = vector.extract_strided_slice %6 {offsets = [1, 0], sizes = [1, 512], strides = [1, 1]} : vector<2x512xf32> to vector<1x512xf32>
    %14 = vector.broadcast %12 : vector<50x1xf32> to vector<50x512xf32>
    %15 = vector.broadcast %13 : vector<1x512xf32> to vector<50x512xf32>
    %16 = arith.mulf %14, %15 : vector<50x512xf32>
    %17 = arith.addf %11, %16 : vector<50x512xf32>
    %18 = vector.extract_strided_slice %0 {offsets = [0, 2], sizes = [50, 1], strides = [1, 1]} : vector<50x3xf32> to vector<50x1xf32>
    %19 = vector.broadcast %18 : vector<50x1xf32> to vector<50x512xf32>
    %20 = arith.addf %17, %19 : vector<50x512xf32>
    %cst = arith.constant 0.000000e+00 : f32
    %21 = vector.broadcast %cst : f32 to vector<50x512xf32>
    %22 = arith.maximumf %20, %21 : vector<50x512xf32>
    %23 = arith.truncf %22 : vector<50x512xf32> to vector<50x512xbf16>
    %cst_11 = arith.constant dense<0.000000e+00> : vector<25x512xf32>
    %24 = tpu.matmul %2, %23, %cst_11 {dimension_numbers = #tpu.dot_dimension_numbers<[1], [0], [0], [1], [0, 0, 1, 1], [], []>} : vector<25x50xbf16>, vector<50x512xbf16>, vector<25x512xf32> -> vector<25x512xf32>
    %25 = vector.broadcast %3 : vector<25x1xf32> to vector<25x512xf32>
    %26 = arith.addf %24, %25 : vector<25x512xf32>
    %cst_12 = arith.constant 0.000000e+00 : f32
    %27 = vector.broadcast %cst_12 : f32 to vector<25x512xf32>
    %28 = arith.maximumf %26, %27 : vector<25x512xf32>
    %29 = vector.broadcast %4 : vector<25x1xf32> to vector<25x512xf32>
    %30 = arith.mulf %29, %28 : vector<25x512xf32>
    %cst_13 = arith.constant dense<0.000000e+00> : vector<512xf32>
    %31 = vector.multi_reduction <add>, %30, %cst_13 [0] : vector<25x512xf32> to vector<512xf32>
    %32 = vector.shape_cast %31 : vector<512xf32> to vector<1x512xf32>
    %33 = vector.broadcast %5 : f32 to vector<1x512xf32>
    %34 = arith.addf %32, %33 : vector<1x512xf32>
    %c0_14 = arith.constant 0 : index
    %c0_15 = arith.constant 0 : index
    %35 = vector.load %arg7[%c0_14, %c0_15] : memref<1x512xf32, #tpu.memory_space<vmem>>, vector<1x512xf32>
    tpu.vector_store %arg7[%c0_14, %c0_15], %34 {strides = array<i32>} : memref<1x512xf32, #tpu.memory_space<vmem>>, vector<1x512xf32>,
    return
  }
  func.func @transform_0(%arg0: i32) -> (i32, i32) {
    %c0_i32 = arith.constant 0 : i32
    %c0_i32_0 = arith.constant 0 : i32
    return %c0_i32, %arg0 : i32, i32
  }
  func.func @transform_1(%arg0: i32) -> (i32, i32) {
    %c0_i32 = arith.constant 0 : i32
    %c0_i32_0 = arith.constant 0 : i32
    %c0_i32_1 = arith.constant 0 : i32
    return %c0_i32, %c0_i32_0 : i32, i32
  }
  func.func @transform_2(%arg0: i32) -> (i32, i32) {
    %c0_i32 = arith.constant 0 : i32
    %c0_i32_0 = arith.constant 0 : i32
    %c0_i32_1 = arith.constant 0 : i32
    return %c0_i32, %c0_i32_0 : i32, i32
  }
  func.func @transform_3(%arg0: i32) -> (i32, i32) {
    %c0_i32 = arith.constant 0 : i32
    %c0_i32_0 = arith.constant 0 : i32
    %c0_i32_1 = arith.constant 0 : i32
    return %c0_i32, %c0_i32_0 : i32, i32
  }
  func.func @transform_4(%arg0: i32) -> (i32, i32) {
    %c0_i32 = arith.constant 0 : i32
    %c0_i32_0 = arith.constant 0 : i32
    %c0_i32_1 = arith.constant 0 : i32
    return %c0_i32, %c0_i32_0 : i32, i32
  }
  func.func @transform_5(%arg0: i32) -> (i32, i32) {
    %c0_i32 = arith.constant 0 : i32
    %c0_i32_0 = arith.constant 0 : i32
    %c0_i32_1 = arith.constant 0 : i32
    return %c0_i32, %c0_i32_0 : i32, i32
  }
  func.func @transform_6(%arg0: i32) -> (i32, i32) {
    %c0_i32 = arith.constant 0 : i32
    %c0_i32_0 = arith.constant 0 : i32
    return %c0_i32, %arg0 : i32, i32
  }
}

</mosaic_0001>

<bundles_post_ra>
// kernel: tpu_custom_call.1
= control target key start
LH: loop header
LB: loop body
LE: loop exit
PB: predicated region body
PF: predicated region fallthrough
CT: control target
= control target key end

     0   :  { %v707_v2 = vmov 0   ;;  %s952_s0 = inlined_call_operand.vmem [shape: f32[2,8], index: 0, kind: input, shape index: {}]   ;;  %s953_s1 = inlined_call_operand.vmem [shape: f32[50,3], index: 1, kind: input, shape index: {}]   ;;  %s954_s2 = inlined_call_operand.vmem [shape: f32[25,50], index: 2, kind: input, shape index: {}]   ;;  %s955_s3 = inlined_call_operand.vmem [shape: f32[25,1], index: 3, kind: input, shape index: {}]   ;;  %s956_s4 = inlined_call_operand.vmem [shape: f32[25,1], index: 4, kind: input, shape index: {}]   ;;  %s957_s5 = inlined_call_operand.<no memory space> [shape: f32[1,1], index: 5, kind: input, shape index: {}]   ;;  %s958_s6 = inlined_call_operand.hbm [shape: f32[1,8], index: 6, kind: output, shape index: {}]  }
   0x1   :  { %v32_v0 = vld [vmem:[%s953_s1 + $0x30] sm:$0x3]  ;;  %v30_v1 = vld [vmem:[%s953_s1 + $0x20] sm:$0xff]  ;;  %672 = vset.pattern.permute.xlu1 %v707_v2  ;;  %671 = vset.pattern.permute.xlu0 %v707_v2 }
   0x2   :  { %81 = vperm.xlu0 %671, %v32_v0   ;;  %71 = vperm.xlu1 %672, %v30_v1  }
   0x3   :  { %12 = vsyncpa [#allocation4], 0  ;;  %v31_v3 = vld [vmem:[%s953_s1 + $0x28] sm:$0xff]  ;;  %v28_v4 = vld [vmem:[%s953_s1 + $0x10] sm:$0xff]  ;;  %441 = vmatprep.mubr.bf16.mxu0 %v707_v2  ;;  %494 = vmatprep.mubr.bf16.mxu1 %v707_v2  ;;  %v708_v6 = vmov 1   ;;  %v709_v7 = vmov 2   ;;  %v85_v18 = vlaneseq }
   0x4   :  { %v26_v5 = vld [vmem:[%s953_s1] sm:$0xff]  ;;  %v29_v8 = vld [vmem:[%s953_s1 + $0x18] sm:$0xff]  ;;  %v27_v9 = vld [vmem:[%s953_s1 + $0x8] sm:$0xff]  ;;  %vm396_vm0 = vcmask 1040384   ;;  %vm389_vm1 = vcmask 408576  }
   0x5   :  { %v39_v10 = vld [vmem:[%s955_s3] sm:$0xff]  ;;  %v40_v11 = vld [vmem:[%s955_s3 + $0x8] sm:$0xff]  ;;  %v41_v12 = vld [vmem:[%s955_s3 + $0x10] sm:$0xff]  ;;  %v801_v19 = vshrl.u32 %v85_v18, 7  ;;  %vm643_vm2 = vcmp.lt.s32.totalorder %v85_v18, 512 }
   0x6   :  { %76 = vperm.xlu1 %672, %v31_v3   ;;  %61 = vperm.xlu0 %671, %v28_v4   ;;  %v43_v13 = vld [vmem:[%s956_s4] sm:$0xff]  ;;  %v42_v14 = vld [vmem:[%s955_s3 + $0x18] sm:$0x1]  ;;  %v45_v15 = vld [vmem:[%s956_s4 + $0x10] sm:$0xff] }
   0x7   :  { %v44_v16 = vld [vmem:[%s956_s4 + $0x8] sm:$0xff]  ;;  %v46_v17 = vld [vmem:[%s956_s4 + $0x18] sm:$0x1]  ;;  %v87_v22 = vsub.s32 0, %v801_v19  ;;  %v91_v23 = vsub.s32 2, %v801_v19  ;;  %v95_v24 = vsub.s32 4, %v801_v19 }
   0x8   :  { %v99_v25 = vsub.s32 6, %v801_v19  ;;  %v48_v26 = vld [vmem:[%s952_s0] sm:$0xff]  ;;  %v179_v27 = vsub.s32 1, %v801_v19  ;;  %v183_v28 = vsub.s32 3, %v801_v19  ;;  %v187_v29 = vsub.s32 5, %v801_v19 }
   0x9   :  { %v191_v30 = vsub.s32 7, %v801_v19  ;;  %v88_v33 = vrot.slane %v48_v26, %v87_v22  ;;  %v92_v34 = vrot.slane %v48_v26, %v91_v23  ;;  %v96_v35 = vrot.slane %v48_v26, %v95_v24 }
   0xa   :  { %673 = vset.pattern.permute.xlu1 %v708_v6  ;;  %51 = vperm.xlu0 %671, %v26_v5   ;;  %v100_v36 = vrot.slane %v48_v26, %v99_v25  ;;  %v180_v37 = vrot.slane %v48_v26, %v179_v27  ;;  %v184_v38 = vrot.slane %v48_v26, %v183_v28 }
   0xb   :  { %166 = vperm.xlu1 %673, %v30_v1   ;;  %v188_v39 = vrot.slane %v48_v26, %v187_v29  ;;  %v192_v40 = vrot.slane %v48_v26, %v191_v30  ;;  %v822_v43 = vrot.slane %v88_v33, %v87_v22  ;;  %v824_v44 = vrot.slane %v92_v34, %v87_v22 }
   0xc   :  { %v826_v45 = vrot.slane %v96_v35, %v87_v22  ;;  %v828_v46 = vrot.slane %v100_v36, %v87_v22  ;;  %v830_v47 = vrot.slane %v180_v37, %v179_v27  ;;  %v832_v48 = vrot.slane %v184_v38, %v179_v27 }
   0xd   :  { %v834_v49 = vrot.slane %v188_v39, %v179_v27  ;;  %v836_v50 = vrot.slane %v192_v40, %v179_v27 }
   0xe   :  { %678 = vset.pattern.permute.xlu0 %v708_v6 }
   0xf   :  { %674 = vset.pattern.permute.xlu1 %v709_v7  ;;  %174 = vperm.xlu0 %678, %v32_v0  }
  0x10   :  { %294 = vperm.xlu1 %674, %v32_v0  }
  0x13   :  { %170 = vperm.xlu0 %678, %v31_v3  }
  0x14   :  { %675 = vset.pattern.permute.xlu1 %v707_v2 }
  0x15   :  { %66 = vperm.xlu1 %675, %v29_v8  }
  0x17   :  { %162 = vperm.xlu0 %678, %v29_v8  }
  0x19   :  { %676 = vset.pattern.permute.xlu1 %v708_v6 }
  0x1a   :  { %158 = vperm.xlu1 %676, %v28_v4  }
  0x1b   :  { %154 = vperm.xlu0 %678, %v27_v9  }
  0x1e   :  { %677 = vset.pattern.permute.xlu1 %v709_v7 }
  0x1f   :  { %286 = vperm.xlu1 %677, %v30_v1   ;;  %682 = vset.pattern.permute.xlu0 %v709_v7 }
  0x20   :  { %270 = vperm.xlu0 %682, %v26_v5  }
  0x23   :  { %290 = vperm.xlu1 %677, %v31_v3  }
  0x24   :  { %684 = vset.pattern.permute.xlu0 %v707_v2 }
  0x25   :  { %376 = vperm.xlu0 %684, %v40_v11  }
  0x27   :  { %679 = vset.pattern.permute.xlu1 %v707_v2 }
  0x28   :  { %56 = vperm.xlu1 %679, %v27_v9  }
  0x29   :  { %533 = vperm.xlu0 %684, %v43_v13  }
  0x2c   :  { %680 = vset.pattern.permute.xlu1 %v708_v6 }
  0x2d   :  { %150 = vperm.xlu1 %680, %v26_v5   ;;  %543 = vperm.xlu0 %684, %v45_v15  }
  0x31   :  { %681 = vset.pattern.permute.xlu1 %v709_v7 }
  0x32   :  { %278 = vperm.xlu1 %681, %v28_v4  }
  0x36   :  { %282 = vperm.xlu1 %681, %v29_v8  }
  0x3a   :  { %274 = vperm.xlu1 %681, %v27_v9  }
  0x3e   :  { %683 = vset.pattern.permute.xlu1 %v707_v2 }
  0x3f   :  { %371 = vperm.xlu1 %683, %v39_v10  }
  0x43   :  { %381 = vperm.xlu1 %683, %v41_v12  }
  0x47   :  { %386 = vperm.xlu1 %683, %v42_v14  }
  0x4b   :  { %538 = vperm.xlu1 %683, %v44_v16  }
  0x4f   :  { %548 = vperm.xlu1 %683, %v46_v17  }
  0x7d   :  { %v803_v20 = vpop.permute.xlu1 %71  ;;  %v82_v21 = vpop.permute.xlu0 %81 }
  0x7e   :  { %v145_v51 = vmul.f32 %v822_v43, %v82_v21  ;;  %v146_v52 = vmul.f32 %v824_v44, %v82_v21  ;;  %v147_v53 = vmul.f32 %v826_v45, %v82_v21  ;;  %v148_v54 = vmul.f32 %v828_v46, %v82_v21 }
  0x7f   :  { %v137_v24 = vmul.f32 %v822_v43, %v803_v20  ;;  %v138_v27 = vmul.f32 %v824_v44, %v803_v20  ;;  %v139_v28 = vmul.f32 %v826_v45, %v803_v20  ;;  %v140_v29 = vmul.f32 %v828_v46, %v803_v20 }
  0x81   :  { %v816_v31 = vpop.permute.xlu1 %76  ;;  %v818_v32 = vpop.permute.xlu0 %61 }
  0x82   :  { %v142_v20 = vmul.f32 %v824_v44, %v816_v31 }
  0x85   :  { %v820_v41 = vpop.permute.xlu0 %51 }
  0x86   :  { %v167_v42 = vpop.permute.xlu1 %166 }
  0x87   :  { %v229_v16 = vmul.f32 %v830_v47, %v167_v42  ;;  %v230_v17 = vmul.f32 %v832_v48, %v167_v42  ;;  %v231_v21 = vmul.f32 %v834_v49, %v167_v42  ;;  %v232_v22 = vmul.f32 %v836_v50, %v167_v42 }
  0x88   :  { %v141_v42 = vmul.f32 %v822_v43, %v816_v31 }
  0x89   :  { %v257_v36 = vadd.f32 %v229_v16, %v137_v24  ;;  %v258_v37 = vadd.f32 %v230_v17, %v138_v27  ;;  %v259_v38 = vadd.f32 %v231_v21, %v139_v28  ;;  %v260_v39 = vadd.f32 %v232_v22, %v140_v29 }
  0x8a   :  { %v175_v55 = vpop.permute.xlu0 %174  ;;  %v130_v22 = vmul.f32 %v824_v44, %v818_v32  ;;  %v132_v24 = vmul.f32 %v828_v46, %v818_v32  ;;  %v123_v27 = vmul.f32 %v826_v45, %v820_v41  ;;  %v124_v28 = vmul.f32 %v828_v46, %v820_v41 }
  0x8b   :  { %v237_v56 = vmul.f32 %v830_v47, %v175_v55  ;;  %v238_v57 = vmul.f32 %v832_v48, %v175_v55  ;;  %v239_v58 = vmul.f32 %v834_v49, %v175_v55  ;;  %v240_v59 = vmul.f32 %v836_v50, %v175_v55  ;;  %v295_v60 = vpop.permute.xlu1 %294 }
  0x8d   :  { %v266_v61 = vadd.f32 %v238_v57, %v146_v52  ;;  %v268_v62 = vadd.f32 %v240_v59, %v148_v54  ;;  %v265_v63 = vadd.f32 %v237_v56, %v145_v51  ;;  %v267_v0 = vadd.f32 %v239_v58, %v147_v53 }
  0x8e   :  { %v171_v23 = vpop.permute.xlu0 %170  ;;  %v143_v51 = vmul.f32 %v826_v45, %v816_v31  ;;  %v144_v52 = vmul.f32 %v828_v46, %v816_v31 }
  0x8f   :  { %v322_v3 = vadd.f32 %v295_v60, %v266_v61  ;;  %v324_v4 = vadd.f32 %v295_v60, %v268_v62  ;;  %v321_v5 = vadd.f32 %v295_v60, %v265_v63  ;;  %v323_v6 = vadd.f32 %v295_v60, %v267_v0 }
  0x90   :  { %v846_v1 = vpop.permute.xlu1 %66  ;;  %v233_v30 = vmul.f32 %v830_v47, %v171_v23  ;;  %v234_v33 = vmul.f32 %v832_v48, %v171_v23  ;;  %v235_v34 = vmul.f32 %v834_v49, %v171_v23  ;;  %v236_v35 = vmul.f32 %v836_v50, %v171_v23 }
  0x91   :  { %v350_v7 = vmax.f32 %v322_v3, 0.0  ;;  %v352_v8 = vmax.f32 %v324_v4, 0.0  ;;  %v349_v9 = vmax.f32 %v321_v5, 0.0  ;;  %v351_v10 = vmax.f32 %v323_v6, 0.0 }
  0x92   :  { %v261_v57 = vadd.f32 %v233_v30, %v141_v42  ;;  %v262_v58 = vadd.f32 %v234_v33, %v142_v20  ;;  %v263_v59 = vadd.f32 %v235_v34, %v143_v51  ;;  %v264_v60 = vadd.f32 %v236_v35, %v144_v52 }
  0x93   :  { %v366_v11 = vpack.c.bf16 %v350_v7, %v350_v7  ;;  %v368_v12 = vpack.c.bf16 %v352_v8, %v352_v8  ;;  %v365_v13 = vpack.c.bf16 %v349_v9, %v349_v9  ;;  %v367_v14 = vpack.c.bf16 %v351_v10, %v351_v10 }
  0x94   :  { %v131_v23 = vmul.f32 %v826_v45, %v818_v32  ;;  %v133_v29 = vmul.f32 %v822_v43, %v846_v1  ;;  %v135_v30 = vmul.f32 %v826_v45, %v846_v1  ;;  %v136_v33 = vmul.f32 %v828_v46, %v846_v1 }
  0x95   :  { %v848_v15 = vpop.permute.xlu1 %158  ;;  %660 = vmatprep.subr.msk.bf16.mxu0 %vm396_vm0, %v366_v11  ;;  %663 = vmatprep.subr.msk.bf16.mxu1 %vm396_vm0, %v368_v12  ;;  %v398_v25 = vsel %vm396_vm0, %v365_v13, 0  ;;  %v404_v26 = vsel %vm396_vm0, %v367_v14, 0  ;;  %v129_v11 = vmul.f32 %v822_v43, %v818_v32  ;;  %v163_v12 = vpop.permute.xlu0 %162  ;;  %v134_v32 = vmul.f32 %v824_v44, %v846_v1 }
  0x96   :  { %418 = vmatpush1.bf16.msra.mxu0 %v398_v25  ;;  %471 = vmatpush1.bf16.msra.mxu1 %v404_v26  ;;  %v121_v25 = vmul.f32 %v822_v43, %v820_v41  ;;  %v122_v26 = vmul.f32 %v824_v44, %v820_v41  ;;  %v225_v34 = vmul.f32 %v830_v47, %v163_v12 }
  0x97   :  { %v226_v41 = vmul.f32 %v832_v48, %v163_v12  ;;  %v227_v35 = vmul.f32 %v834_v49, %v163_v12  ;;  %v224_v1 = vmul.f32 %v836_v50, %v848_v15 }
  0x9a   :  { %v287_v40 = vpop.permute.xlu1 %286 }
  0x9b   :  { %v313_v53 = vadd.f32 %v287_v40, %v257_v36  ;;  %v314_v54 = vadd.f32 %v287_v40, %v258_v37  ;;  %v315_v55 = vadd.f32 %v287_v40, %v259_v38  ;;  %v316_v56 = vadd.f32 %v287_v40, %v260_v39  ;;  %v155_v36 = vpop.permute.xlu0 %154 }
  0x9c   :  { %v228_v37 = vmul.f32 %v836_v50, %v163_v12  ;;  %v221_v38 = vmul.f32 %v830_v47, %v848_v15  ;;  %v222_v39 = vmul.f32 %v832_v48, %v848_v15  ;;  %v223_v40 = vmul.f32 %v834_v49, %v848_v15 }
  0x9d   :  { %v342_v4 = vmax.f32 %v314_v54, 0.0  ;;  %v344_v5 = vmax.f32 %v316_v56, 0.0  ;;  %v341_v6 = vmax.f32 %v313_v53, 0.0  ;;  %v343_v7 = vmax.f32 %v315_v55, 0.0 }
  0x9e   :  { %v291_v61 = vpop.permute.xlu1 %290  ;;  %v217_v53 = vmul.f32 %v830_v47, %v155_v36  ;;  %v218_v54 = vmul.f32 %v832_v48, %v155_v36  ;;  %v219_v55 = vmul.f32 %v834_v49, %v155_v36  ;;  %v220_v56 = vmul.f32 %v836_v50, %v155_v36 }
  0x9f   :  { %v317_v62 = vadd.f32 %v291_v61, %v261_v57  ;;  %v318_v63 = vadd.f32 %v291_v61, %v262_v58  ;;  %v319_v0 = vadd.f32 %v291_v61, %v263_v59  ;;  %v320_v3 = vadd.f32 %v291_v61, %v264_v60 }
  0xa1   :  { %v346_v8 = vmax.f32 %v318_v63, 0.0  ;;  %v348_v9 = vmax.f32 %v320_v3, 0.0  ;;  %v345_v31 = vmax.f32 %v317_v62, 0.0  ;;  %v347_v10 = vmax.f32 %v319_v0, 0.0 }
  0xa2   :  { %v249_v0 = vadd.f32 %v221_v38, %v129_v11  ;;  %v251_v3 = vadd.f32 %v223_v40, %v131_v23 }
  0xa3   :  { %v57_v13 = vpop.permute.xlu1 %56  ;;  %v362_v14 = vpack.c.bf16 %v346_v8, %v342_v4  ;;  %v364_v16 = vpack.c.bf16 %v348_v9, %v344_v5  ;;  %v361_v17 = vpack.c.bf16 %v345_v31, %v341_v6  ;;  %v363_v21 = vpack.c.bf16 %v347_v10, %v343_v7 }
  0xa4   :  { %v125_v15 = vmul.f32 %v822_v43, %v57_v13  ;;  %v126_v61 = vmul.f32 %v824_v44, %v57_v13  ;;  %v127_v62 = vmul.f32 %v826_v45, %v57_v13  ;;  %v128_v63 = vmul.f32 %v828_v46, %v57_v13 }
  0xa5   :  { %419 = vmatprep.subr.bf16.mxu0 %v362_v14  ;;  %472 = vmatprep.subr.bf16.mxu1 %v364_v16  ;;  %v252_v4 = vadd.f32 %v224_v1, %v132_v24  ;;  %v254_v6 = vadd.f32 %v226_v41, %v134_v32  ;;  %v256_v7 = vadd.f32 %v228_v37, %v136_v33 }
  0xa6   :  { %420 = vmatpush1.bf16.msra.mxu0 %v361_v17  ;;  %473 = vmatpush1.bf16.msra.mxu1 %v363_v21  ;;  %v245_v10 = vadd.f32 %v217_v53, %v125_v15  ;;  %v246_v44 = vadd.f32 %v218_v54, %v126_v61  ;;  %v247_v12 = vadd.f32 %v219_v55, %v127_v62  ;;  %v34_v15 = vld [vmem:[%s954_s2 + $0x8] sm:$0xff] }
  0xa7   :  { %v248_v45 = vadd.f32 %v220_v56, %v128_v63  ;;  %v35_v63 = vld [vmem:[%s954_s2 + $0x10] sm:$0xff] }
  0xa8   :  { %v151_v42 = vpop.permute.xlu1 %150 }
  0xa9   :  { %v213_v20 = vmul.f32 %v830_v47, %v151_v42  ;;  %v214_v51 = vmul.f32 %v832_v48, %v151_v42  ;;  %v216_v52 = vmul.f32 %v836_v50, %v151_v42  ;;  %v215_v57 = vmul.f32 %v834_v49, %v151_v42  ;;  %v271_v47 = vpop.permute.xlu0 %270 }
  0xaa   :  { %v250_v48 = vadd.f32 %v222_v39, %v130_v22  ;;  %v253_v50 = vadd.f32 %v225_v34, %v133_v29  ;;  %v255_v49 = vadd.f32 %v227_v35, %v135_v30 }
  0xab   :  { %v241_v58 = vadd.f32 %v213_v20, %v121_v25  ;;  %v242_v59 = vadd.f32 %v214_v51, %v122_v26  ;;  %v244_v60 = vadd.f32 %v216_v52, %v124_v28  ;;  %v243_v8 = vadd.f32 %v215_v57, %v123_v27 }
  0xad   :  { %v279_v5 = vpop.permute.xlu1 %278  ;;  %v297_v9 = vadd.f32 %v271_v47, %v241_v58  ;;  %v298_v31 = vadd.f32 %v271_v47, %v242_v59  ;;  %v300_v43 = vadd.f32 %v271_v47, %v244_v60  ;;  %v299_v24 = vadd.f32 %v271_v47, %v243_v8  ;;  %v33_v60 = vld [vmem:[%s954_s2] sm:$0xff]  ;;  %v36_v47 = vld [vmem:[%s954_s2 + $0x18] sm:$0x1] }
  0xae   :  { %v305_v14 = vadd.f32 %v279_v5, %v249_v0  ;;  %v306_v46 = vadd.f32 %v279_v5, %v250_v48  ;;  %v307_v13 = vadd.f32 %v279_v5, %v251_v3  ;;  %v308_v11 = vadd.f32 %v279_v5, %v252_v4 }
  0xaf   :  { %v326_v25 = vmax.f32 %v298_v31, 0.0  ;;  %v328_v26 = vmax.f32 %v300_v43, 0.0  ;;  %v325_v27 = vmax.f32 %v297_v9, 0.0  ;;  %v327_v56 = vmax.f32 %v299_v24, 0.0 }
  0xb0   :  { %v334_v34 = vmax.f32 %v306_v46, 0.0  ;;  %v336_v41 = vmax.f32 %v308_v11, 0.0  ;;  %v333_v35 = vmax.f32 %v305_v14, 0.0  ;;  %v335_v36 = vmax.f32 %v307_v13, 0.0 }
  0xb1   :  { %v283_v16 = vpop.permute.xlu1 %282  ;;  %v37_v62 = vpack.c.bf16 %v34_v15, %v33_v60  ;;  %v38_v0 = vpack.c.bf16 %v36_v47, %v35_v63 }
  0xb2   :  { %v309_v17 = vadd.f32 %v283_v16, %v253_v50  ;;  %v310_v21 = vadd.f32 %v283_v16, %v254_v6  ;;  %v311_v22 = vadd.f32 %v283_v16, %v255_v49  ;;  %v312_v23 = vadd.f32 %v283_v16, %v256_v7  ;;  %v377_v50 = vpop.permute.xlu0 %376 }
  0xb4   :  { %v338_v28 = vmax.f32 %v310_v21, 0.0  ;;  %v340_v29 = vmax.f32 %v312_v23, 0.0  ;;  %v337_v32 = vmax.f32 %v309_v17, 0.0  ;;  %v339_v30 = vmax.f32 %v311_v22, 0.0 }
  0xb5   :  { %v275_v33 = vpop.permute.xlu1 %274 }
  0xb6   :  { %v301_v37 = vadd.f32 %v275_v33, %v245_v10  ;;  %v302_v38 = vadd.f32 %v275_v33, %v246_v44  ;;  %v303_v39 = vadd.f32 %v275_v33, %v247_v12  ;;  %v304_v40 = vadd.f32 %v275_v33, %v248_v45  ;;  %v534_v11 = vpop.permute.xlu0 %533 }
  0xb7   :  { %v358_v42 = vpack.c.bf16 %v338_v28, %v334_v34  ;;  %v360_v1 = vpack.c.bf16 %v340_v29, %v336_v41  ;;  %v357_v20 = vpack.c.bf16 %v337_v32, %v333_v35  ;;  %v359_v51 = vpack.c.bf16 %v339_v30, %v335_v36 }
  0xb8   :  { %v330_v52 = vmax.f32 %v302_v38, 0.0  ;;  %v332_v53 = vmax.f32 %v304_v40, 0.0  ;;  %v329_v54 = vmax.f32 %v301_v37, 0.0  ;;  %v331_v55 = vmax.f32 %v303_v39, 0.0 }
  0xb9   :  { %421 = vmatprep.subr.bf16.mxu0 %v358_v42  ;;  %474 = vmatprep.subr.bf16.mxu1 %v360_v1 }
  0xba   :  { %422 = vmatpush1.bf16.msra.mxu0 %v357_v20  ;;  %475 = vmatpush1.bf16.msra.mxu1 %v359_v51  ;;  %v354_v57 = vpack.c.bf16 %v330_v52, %v326_v25  ;;  %v356_v58 = vpack.c.bf16 %v332_v53, %v328_v26  ;;  %v353_v59 = vpack.c.bf16 %v329_v54, %v325_v27  ;;  %v372_v48 = vpop.permute.xlu1 %371  ;;  %v544_v53 = vpop.permute.xlu0 %543 }
  0xbb   :  { %v355_v61 = vpack.c.bf16 %v331_v55, %v327_v56 }
  0xbc   :  { %423 = vmatprep.subr.bf16.mxu0 %v354_v57  ;;  %476 = vmatprep.subr.bf16.mxu1 %v356_v58 }
  0xbe   :  { %424 = vmatpush1.bf16.msra.mxu0 %v353_v59  ;;  %477 = vmatpush1.bf16.msra.mxu1 %v355_v61  ;;  %v382_v3 = vpop.permute.xlu1 %381 }
  0xc1   :  { %661 = vmatmul.mubr.msk.bf16.vlgmr.msra.gmra.mxu0 %vm389_vm1, %v37_v62  ;;  %664 = vmatmul.mubr.msk.bf16.vlgmr.msra.gmra.mxu1 %vm389_vm1, %v37_v62 }
  0xc2   :  { %451 = vmatprep.mubr.bf16.mxu0 %v707_v2  ;;  %504 = vmatprep.mubr.bf16.mxu1 %v707_v2  ;;  %v387_v8 = vpop.permute.xlu1 %386 }
  0xc6   :  { %v539_v25 = vpop.permute.xlu1 %538 }
  0xc9   :  { %662 = vmatmul.mubr.msk.bf16.gmra.mxu0 %vm389_vm1, %v38_v0  ;;  %665 = vmatmul.mubr.msk.bf16.gmra.mxu1 %vm389_vm1, %v38_v0 }
  0xca   :  { %v549_v0 = vpop.permute.xlu1 %548 }
 0x181   :  { %v443_v4 = vpop.f32.mrf.mxu0  ;;  %v496_v5 = vpop.f32.mrf.mxu1 }
 0x182   :  { %v444_v6 = vadd.f32 %v443_v4, %v372_v48  ;;  %v497_v49 = vadd.f32 %v496_v5, %v372_v48 }
 0x183   :  { %v445_v7 = vpop.f32.mrf.mxu0  ;;  %v498_v2 = vpop.f32.mrf.mxu1 }
 0x184   :  { %v446_v43 = vadd.f32 %v445_v7, %v372_v48  ;;  %v499_v10 = vadd.f32 %v498_v2, %v372_v48  ;;  %v515_v45 = vmax.f32 %v444_v6, 0.0  ;;  %v517_v14 = vmax.f32 %v497_v49, 0.0 }
 0x185   :  { %v447_v9 = vpop.f32.mrf.mxu0  ;;  %v500_v31 = vpop.f32.mrf.mxu1 }
 0x186   :  { %v448_v44 = vadd.f32 %v447_v9, %v377_v50  ;;  %v501_v12 = vadd.f32 %v500_v31, %v377_v50  ;;  %v516_v26 = vmax.f32 %v446_v43, 0.0  ;;  %v518_v27 = vmax.f32 %v499_v10, 0.0 }
 0x187   :  { %v449_v46 = vpop.f32.mrf.mxu0  ;;  %v502_v13 = vpop.f32.mrf.mxu1  ;;  %v551_v32 = vmul.f32 %v534_v11, %v515_v45  ;;  %v553_v30 = vmul.f32 %v534_v11, %v517_v14 }
 0x188   :  { %v519_v16 = vmax.f32 %v448_v44, 0.0  ;;  %v521_v17 = vmax.f32 %v501_v12, 0.0  ;;  %v450_v21 = vadd.f32 %v449_v46, %v377_v50  ;;  %v503_v22 = vadd.f32 %v502_v13, %v377_v50 }
 0x189   :  { %v453_v23 = vpop.f32.mrf.mxu0  ;;  %v506_v24 = vpop.f32.mrf.mxu1  ;;  %v552_v51 = vmul.f32 %v534_v11, %v516_v26  ;;  %v554_v52 = vmul.f32 %v534_v11, %v518_v27 }
 0x18a   :  { %v454_v28 = vadd.f32 %v453_v23, %v382_v3  ;;  %v507_v29 = vadd.f32 %v506_v24, %v382_v3  ;;  %v520_v41 = vmax.f32 %v450_v21, 0.0  ;;  %v522_v35 = vmax.f32 %v503_v22, 0.0 }
 0x18b   :  { %v455_v33 = vpop.f32.mrf.mxu0  ;;  %v508_v34 = vpop.f32.mrf.mxu1  ;;  %v555_v38 = vmul.f32 %v539_v25, %v519_v16  ;;  %v557_v39 = vmul.f32 %v539_v25, %v521_v17 }
 0x18c   :  { %v523_v36 = vmax.f32 %v454_v28, 0.0  ;;  %v525_v37 = vmax.f32 %v507_v29, 0.0  ;;  %v456_v40 = vadd.f32 %v455_v33, %v382_v3  ;;  %v509_v42 = vadd.f32 %v508_v34, %v382_v3 }
 0x18d   :  { %v457_v1 = vpop.f32.mrf.mxu0  ;;  %v510_v20 = vpop.f32.mrf.mxu1  ;;  %v556_v61 = vmul.f32 %v539_v25, %v520_v41  ;;  %v558_v62 = vmul.f32 %v539_v25, %v522_v35  ;;  %v567_v48 = vadd.f32 %v555_v38, %v551_v32  ;;  %v587_v3 = vadd.f32 %v557_v39, %v553_v30 }
 0x18e   :  { %v458_v54 = vadd.f32 %v457_v1, %v387_v8  ;;  %v511_v55 = vadd.f32 %v510_v20, %v387_v8  ;;  %v559_v56 = vmul.f32 %v544_v53, %v523_v36  ;;  %v561_v57 = vmul.f32 %v544_v53, %v525_v37 }
 0x18f   :  { %v524_v58 = vmax.f32 %v456_v40, 0.0  ;;  %v526_v59 = vmax.f32 %v509_v42, 0.0  ;;  %v459_v60 = vpop.f32.mrf.mxu0  ;;  %v512_v15 = vpop.f32.mrf.mxu1  ;;  %v577_v10 = vadd.f32 %v556_v61, %v552_v51  ;;  %v597_v44 = vadd.f32 %v558_v62, %v554_v52 }
 0x190   :  { %v527_v63 = vmax.f32 %v458_v54, 0.0  ;;  %v529_v47 = vmax.f32 %v511_v55, 0.0  ;;  %v460_v4 = vadd.f32 %v459_v60, %v387_v8  ;;  %v513_v5 = vadd.f32 %v512_v15, %v387_v8 }
 0x191   :  { %v560_v50 = vmul.f32 %v544_v53, %v524_v58  ;;  %v562_v6 = vmul.f32 %v544_v53, %v526_v59  ;;  %v568_v2 = vadd.f32 %v567_v48, %v559_v56  ;;  %v588_v9 = vadd.f32 %v587_v3, %v561_v57 }
 0x192   :  { %v563_v49 = vmul.f32 %v549_v0, %v527_v63  ;;  %v565_v7 = vmul.f32 %v549_v0, %v529_v47  ;;  %v528_v31 = vmax.f32 %v460_v4, 0.0  ;;  %v530_v43 = vmax.f32 %v513_v5, 0.0 }
 0x193   :  { %v578_v16 = vadd.f32 %v577_v10, %v560_v50  ;;  %v598_v8 = vadd.f32 %v597_v44, %v562_v6  ;;  %v710_v36 = vmov 1966171168   ;;  %v607_v56 = vstv %s957_s5 }
 0x194   :  { %v569_v12 = vsel %vm396_vm0, %v563_v49, 0.0  ;;  %v589_v45 = vsel %vm396_vm0, %v565_v7, 0.0  ;;  %v564_v13 = vmul.f32 %v549_v0, %v528_v31  ;;  %v566_v11 = vmul.f32 %v549_v0, %v530_v43 }
 0x195   :  { %v570_v14 = vadd.f32 %v569_v12, %v568_v2  ;;  %v590_v46 = vadd.f32 %v589_v45, %v588_v9  ;;  %v619_v37 = vunpack.c.l.s4 %v710_v36 }
 0x196   :  { %v579_v22 = vsel %vm396_vm0, %v564_v13, 0.0  ;;  %v599_v23 = vsel %vm396_vm0, %v566_v11, 0.0 }
 0x197   :  { %v571_v17 = vrot.slane %v570_v14, 4  ;;  %v591_v21 = vrot.slane %v590_v46, 4  ;;  %v580_v24 = vadd.f32 %v579_v22, %v578_v16  ;;  %v600_v25 = vadd.f32 %v599_v23, %v598_v8 }
 0x198   :  { %v620_v51 = vunpack.c.0.s8 %v619_v37 }
 0x199   :  { %v572_v26 = vadd.f32 %v571_v17, %v570_v14  ;;  %v592_v27 = vadd.f32 %v591_v21, %v590_v46  ;;  %v581_v28 = vrot.slane %v580_v24, 4  ;;  %v601_v29 = vrot.slane %v600_v25, 4 }
 0x19a   :  { %v623_v59 = vsub.s32 %v620_v51, %v801_v19 }
 0x19b   :  { %v573_v32 = vrot.slane %v572_v26, 2  ;;  %v593_v30 = vrot.slane %v592_v27, 2  ;;  %v582_v33 = vadd.f32 %v581_v28, %v580_v24  ;;  %v602_v34 = vadd.f32 %v601_v29, %v600_v25 }
 0x19d   :  { %v574_v41 = vadd.f32 %v573_v32, %v572_v26  ;;  %v594_v35 = vadd.f32 %v593_v30, %v592_v27  ;;  %v583_v38 = vrot.slane %v582_v33, 2  ;;  %v603_v39 = vrot.slane %v602_v34, 2 }
 0x19f   :  { %v575_v40 = vrot.slane %v574_v41, 1  ;;  %v595_v42 = vrot.slane %v594_v35, 1  ;;  %v584_v1 = vadd.f32 %v583_v38, %v582_v33  ;;  %v604_v20 = vadd.f32 %v603_v39, %v602_v34 }
 0x1a1   :  { %v576_v52 = vadd.f32 %v575_v40, %v574_v41  ;;  %v596_v53 = vadd.f32 %v595_v42, %v594_v35  ;;  %v585_v54 = vrot.slane %v584_v1, 1  ;;  %v605_v55 = vrot.slane %v604_v20, 1 }
 0x1a3   :  { %v586_v57 = vadd.f32 %v585_v54, %v584_v1  ;;  %v606_v58 = vadd.f32 %v605_v55, %v604_v20  ;;  %v608_v60 = vadd.f32 %v607_v56, %v576_v52  ;;  %v610_v15 = vadd.f32 %v607_v56, %v596_v53 }
 0x1a5   :  { %v609_v61 = vadd.f32 %v607_v56, %v586_v57  ;;  %v611_v62 = vadd.f32 %v607_v56, %v606_v58 }
 0x1a7   :  { %v616_v63 = vcombine.low %v608_v60, %v609_v61  ;;  %v617_v47 = vcombine.low %v610_v15, %v611_v62 }
 0x1a9   :  { %v624_v0 = vrot.slane %v616_v63, %v623_v59  ;;  %v631_v48 = vrot.slane %v617_v47, %v623_v59 }
 0x1ab   :  { %v632_v3 = vcombine.low %v624_v0, %v631_v48 }
 0x1ad   :  { %v639_v4 = vrot.slane %v632_v3, %v623_v59 }
 0x1af   :  { %645 = vst.msk [vmem:[#allocation3] sm:$0xf] %vm643_vm2, %v639_v4 }
 0x1b0   :  { %650 = vsyncadd [#allocation4], 48  ;;  %s711_s10 = smov [#allocation3]  }
 0x1b1   :  { %s652_s5 = sshll.u32 %s711_s10, 4  ;;  %s653_s5 = int_to_ptr.vmem [resolvable:$true] %s652_s5 }
 0x1b2   :  { %s685_s1 = scalar_lea.vmem %s653_s5, 16  ;;  %s689_s11 = scalar_lea.vmem %s653_s5, 64 }
 0x1b3   :  { %p686_p0 = scmp.ne.s32.totalorder %s653_s5, %s685_s1  ;;  %p690_p1 = scmp.lt.s32.totalorder %s653_s5, %s653_s5 }
 0x1b4   :  { %p691_p2 = scmp.lt.s32.totalorder %s689_s11, %s685_s1 }
 0x1b6   :  { %p692_p3 = por %p691_p2, %p690_p1 }
 0x1b8   :  { %p693_p4 = pnand %p692_p3, %p686_p0 }
 0x1ba   :  { %696 = shalt.err (!%p693_p4)
}
 0x1bb   :  { %655 = dma.vmem_to_hbm [thread:$0]  %s653_s5, 16, %s958_s6, [#allocation4]  }
 0x1bc   :  { %705 = dma.done.wait [#allocation4], 64  }
 0x1bd   :  { %706 = vsyncadd [#allocation4], 4294967232 }
 0x1be   :  { %659 = vsyncpa [#allocation4], 1 }

</bundles_post_ra>
